<compile_context>
chip_gen: v5e
topology: v5e:2x2
jax: 0.10.0
libtpu: 0.0.40
codegen_flags: <defaults>
</compile_context>

<pallas_src>
import jax
import jax.numpy as jnp
from jax import lax
from jax.experimental import pallas as pl
from jax.experimental.pallas import tpu as pltpu


def _physical_vmem_bytes():
    """Per-core physical VMEM; conservative 64 MiB (v7x) fallback if the query fails."""
    try:
        info = pltpu.get_tpu_info()
        v = int(getattr(info, "vmem_capacity_bytes", 0) or 0)
        if v > 0:
            return v
    except Exception:
        pass
    return 64 << 20


def _pick_batch_tile(B, fits):
    """Largest divisor of B whose block footprint fits; keeps >= 2 grid steps when B > 1
    so v7x's two TensorCores both get work."""
    divisors = [d for d in range(1, B + 1) if B % d == 0]
    fitting = [d for d in divisors if fits(d)] or [1]
    bt = max(fitting)
    if B > 1 and bt == B:
        bt = max(d for d in divisors if d < B)
    return bt


def _pick_channel_chunk(C, max_c=64):
    """Largest multiple-of-8 divisor of C that is <= max_c; C itself if already small or
    if no such divisor exists (bounds live vregs in the streaming passes)."""
    if C <= max_c:
        return C
    cands = [d for d in range(8, max_c + 1, 8) if C % d == 0]
    return max(cands) if cands else C


def _pick_spatial_chunk(bt, cc, HW, target_bytes=64 * 1024):
    """Spatial-chunk length: a divisor of H*W, a multiple of 128 lanes when possible,
    sized so one (bt, cc, S) f32 chunk stays vreg-friendly (~target_bytes)."""
    if bt * cc * HW * 4 <= target_bytes:
        return HW
    if HW % 128 == 0:
        s = 128
        while HW % (2 * s) == 0 and bt * cc * (2 * s) * 4 <= target_bytes:
            s *= 2
        return s
    cands = [d for d in range(1, HW + 1)
             if HW % d == 0 and bt * cc * d * 4 <= target_bytes]
    return max(cands) if cands else HW


def cbam_forward(x_nchw, params, *, vmem_budget_bytes=24 << 20):
    """CBAM forward.  x_nchw: (B, C, H, W); params from init_cbam_params.  Returns NCHW.

    Computes in f32 and stores in x's dtype; pass bf16 x on v6e/v7x to halve HBM traffic.
    """
    w1, b1, w2, b2, wsp = params
    B, C, H, W = x_nchw.shape
    Cr = w1.shape[1]
    ks = int(round(((wsp.shape[0] - 1) / 2) ** 0.5))       # spatial kernel size
    pad = ks // 2
    HW = H * W
    itemsize = x_nchw.dtype.itemsize
    inv_hw = 1.0 / float(HW)
    inv_c = 1.0 / float(C)

    # Lane-dense view: contiguous NCHW -> (B, C, H*W) is a free reshape.
    x_flat = x_nchw.reshape(B, C, HW)

    # Flat (h, w) index maps built in the wrapper so the kernel's conv border masks need
    # no in-kernel vector div/mod.
    h_idx = (jnp.arange(HW, dtype=jnp.int32) // W).reshape(1, HW)
    w_idx = (jnp.arange(HW, dtype=jnp.int32) % W).reshape(1, HW)

    # ---------------- generation-aware VMEM budgeting ----------------
    usable = max(_physical_vmem_bytes() - (8 << 20), 16 << 20)
    budget = min(vmem_budget_bytes, usable)
    weights_bytes = 4 * (C * Cr + Cr + Cr * C + C) + 4 * (2 * ks * ks + 1) + 2 * HW * 4

    def est_vmem(bt, nbuf):
        blocks = 2 * nbuf * bt * C * HW * itemsize          # x in + out, nbuf-deep pipeline
        scratch = 3 * bt * HW * 4                           # avg / max / sa maps
        return blocks + 2 * weights_bytes + scratch + (2 << 20)

    Bt = _pick_batch_tile(B, lambda d: est_vmem(d, 2) <= budget)
    nbuf = 2
    if est_vmem(Bt, 2) > budget:
        if est_vmem(Bt, 2) <= usable:
            pass                                            # exceed the soft budget only
        elif est_vmem(Bt, 1) <= usable:
            nbuf = 1                                        # single-buffer x/out (huge images)
        # TODO(synk): if even a single-buffered Bt=1 block exceeds physical VMEM
        # (very large H*W), a halo-tiled multi-kernel split over rows is required.
    # TODO(synk): for B == 1 on v7x a single grid step leaves the second TensorCore idle;
    # a channel-group 'parallel' axis with a small stats recombine would fix that.

    Cc = _pick_channel_chunk(C)
    NC = C // Cc
    S = _pick_spatial_chunk(Bt, Cc, HW)
    NS = HW // S
    unroll_sp = NS <= 4

    def kernel(x_ref, w1_ref, b1_ref, w2_ref, b2_ref, wsp_ref, hid_ref, wid_ref,
               o_ref, mavg_s, mmax_s, sa_s):
        f32 = jnp.float32

        def sp_start(i):
            s = i * S
            return pl.multiple_of(s, 128) if S % 128 == 0 else s

        # ---- pass 1: per-channel sum & max over H*W (deferred cross-lane reduce) ----
        sums, maxs = [], []
        for ci in range(NC):
            c0 = ci * Cc

            def stats_body(i, carry, c0=c0):
                s_acc, m_acc = carry
                xc = x_ref[:, c0:c0 + Cc, pl.ds(sp_start(i), S)].astype(f32)
                return s_acc + xc, jnp.maximum(m_acc, xc)

            s_acc, m_acc = lax.fori_loop(
                0, NS, stats_body,
                (jnp.zeros((Bt, Cc, S), f32),
                 jnp.full((Bt, Cc, S), -jnp.inf, f32)),
                unroll=unroll_sp)
            sums.append(jnp.sum(s_acc, axis=2))             # (Bt, Cc)
            maxs.append(jnp.max(m_acc, axis=2))
        s_all = sums[0] if NC == 1 else jnp.concatenate(sums, axis=1)   # (Bt, C)
        m_all = maxs[0] if NC == 1 else jnp.concatenate(maxs, axis=1)

        # ---- channel MLP: both branches fused into one (2*Bt, C) matmul pair ----
        stacked = jnp.concatenate([s_all * inv_hw, m_all], axis=0)      # (2*Bt, C)
        hmid = jnp.dot(stacked, w1_ref[...], preferred_element_type=f32) + b1_ref[...]
        hmid = jnp.maximum(hmid, 0.0)
        logits = jnp.dot(hmid, w2_ref[...], preferred_element_type=f32) + b2_ref[...]
        ca = jax.nn.sigmoid(logits[:Bt, :] + logits[Bt:, :])            # (Bt, C)

        # ---- pass 2: channel-sum / channel-max maps of y = x*ca (y never stored) ----
        for ci in range(NC):
            c0 = ci * Cc
            # Lane splat of ca for this channel chunk is done ONCE, outside the loop.
            ca_c = jnp.broadcast_to(ca[:, c0:c0 + Cc, None], (Bt, Cc, S))

            def maps_body(i, _, c0=c0, ca_c=ca_c, first=(ci == 0)):
                st = sp_start(i)
                yc = x_ref[:, c0:c0 + Cc, pl.ds(st, S)].astype(f32) * ca_c
                ysum = jnp.sum(yc, axis=1)                   # (Bt, S)
                ymax = jnp.max(yc, axis=1)
                if first:
                    mavg_s[:, pl.ds(st, S)] = ysum
                    mmax_s[:, pl.ds(st, S)] = ymax
                else:
                    mavg_s[:, pl.ds(st, S)] = mavg_s[:, pl.ds(st, S)] + ysum
                    mmax_s[:, pl.ds(st, S)] = jnp.maximum(mmax_s[:, pl.ds(st, S)], ymax)
                return 0

            lax.fori_loop(0, NS, maps_body, 0, unroll=unroll_sp)

        # ---- spatial k x k 'same' conv on the small maps: lane rolls + border masks ----
        h_id = hid_ref[...]                                  # (1, HW) int32
        w_id = wid_ref[...]
        m_a = mavg_s[...] * inv_c                            # channel mean
        m_m = mmax_s[...]
        cols = []                                            # width-direction taps, masked
        for c, m in enumerate((m_a, m_m)):
            for dw in range(ks):
                sw = dw - pad
                r = m if sw == 0 else pltpu.roll(m, (-sw) % HW, axis=1)
                okw = (w_id + sw >= 0) & (w_id + sw < W)
                cols.append(jnp.where(okw, r, 0.0))
        acc = jnp.zeros((Bt, HW), f32)
        for dh in range(ks):
            t = jnp.zeros((Bt, HW), f32)
            for c in range(2):
                for dw in range(ks):
                    t = t + cols[c * ks + dw] * wsp_ref[c * ks * ks + dh * ks + dw]
            sh = dh - pad
            tr = t if sh == 0 else pltpu.roll(t, (-sh * W) % HW, axis=1)
            okh = (h_id + sh >= 0) & (h_id + sh < H)
            acc = acc + jnp.where(okh, tr, 0.0)
        sa_s[...] = jax.nn.sigmoid(acc + wsp_ref[2 * ks * ks])

        # ---- pass 3: out = x * ca * sa; every output element written exactly once ----
        for ci in range(NC):
            c0 = ci * Cc
            ca_c = jnp.broadcast_to(ca[:, c0:c0 + Cc, None], (Bt, Cc, S))

            def out_body(i, _, c0=c0, ca_c=ca_c):
                st = sp_start(i)
                xc = x_ref[:, c0:c0 + Cc, pl.ds(st, S)].astype(f32)
                sac = sa_s[:, pl.ds(st, S)]                  # (Bt, S); cheap sublane bcast
                o_ref[:, c0:c0 + Cc, pl.ds(st, S)] = (
                    xc * ca_c * sac[:, None, :]).astype(o_ref.dtype)
                return 0

            lax.fori_loop(0, NS, out_body, 0, unroll=unroll_sp)

    spec_kwargs = {} if nbuf == 2 else dict(pipeline_mode=pl.Buffered(1))
    x_spec = pl.BlockSpec((Bt, C, HW), lambda b: (b, 0, 0), **spec_kwargs)
    out_spec = pl.BlockSpec((Bt, C, HW), lambda b: (b, 0, 0), **spec_kwargs)

    in_specs = [
        x_spec,
        pl.BlockSpec((C, Cr), lambda b: (0, 0)),
        pl.BlockSpec((1, Cr), lambda b: (0, 0)),
        pl.BlockSpec((Cr, C), lambda b: (0, 0)),
        pl.BlockSpec((1, C), lambda b: (0, 0)),
        pl.BlockSpec(memory_space=pltpu.MemorySpace.SMEM),   # conv weights + bias scalars
        pl.BlockSpec((1, HW), lambda b: (0, 0)),             # flat h index
        pl.BlockSpec((1, HW), lambda b: (0, 0)),             # flat w index
    ]

    out_flat = pl.pallas_call(
        kernel,
        out_shape=jax.ShapeDtypeStruct((B, C, HW), x_nchw.dtype),
        grid=(B // Bt,),
        in_specs=in_specs,
        out_specs=out_spec,
        scratch_shapes=[
            pltpu.VMEM((Bt, HW), jnp.float32),   # channel-sum (avg) map
            pltpu.VMEM((Bt, HW), jnp.float32),   # channel-max map
            pltpu.VMEM((Bt, HW), jnp.float32),   # spatial attention
        ],
        compiler_params=pltpu.CompilerParams(
            dimension_semantics=("parallel",),
            vmem_limit_bytes=int(usable)),
    )(x_flat, w1, b1, w2, b2, wsp.astype(jnp.float32), h_idx, w_idx)

    return out_flat.reshape(B, C, H, W)


def init_cbam_params(key, in_channels, reduction=16, spatial_kernel_size=3):
    """Deterministic PyTorch-style (uniform +-1/sqrt(fan_in)) init."""
    C = in_channels
    Cr = max(C // reduction, 1)
    k = spatial_kernel_size
    k1, k2, k3, k4, k5, k6 = jax.random.split(key, 6)

    b_fc1 = 1.0 / jnp.sqrt(C)
    w1 = jax.random.uniform(k1, (C, Cr), jnp.float32, -b_fc1, b_fc1)   # fc1.weight.T
    b1 = jax.random.uniform(k2, (1, Cr), jnp.float32, -b_fc1, b_fc1)

    b_fc2 = 1.0 / jnp.sqrt(Cr)
    w2 = jax.random.uniform(k3, (Cr, C), jnp.float32, -b_fc2, b_fc2)   # fc2.weight.T
    b2 = jax.random.uniform(k4, (1, C), jnp.float32, -b_fc2, b_fc2)

    b_sp = 1.0 / jnp.sqrt(2.0 * k * k)
    wsp_w = jax.random.uniform(k5, (2 * k * k,), jnp.float32, -b_sp, b_sp)
    wsp_b = jax.random.uniform(k6, (1,), jnp.float32, -b_sp, b_sp)
    wsp = jnp.concatenate([wsp_w, wsp_b], axis=0)                      # (2*k*k + 1,)

    return w1, b1, w2, b2, wsp


def cbam_reference(x_nchw, params):
    """Pure-JAX reference matching the PyTorch module (NCHW, f32, high precision)."""
    w1, b1, w2, b2, wsp = params
    ks = int(round(((wsp.shape[0] - 1) / 2) ** 0.5))
    pad = ks // 2

    # channel attention
    avg = jnp.mean(x_nchw, axis=(2, 3))          # (B, C)
    mx = jnp.max(x_nchw, axis=(2, 3))            # (B, C)

    def mlp(v):
        h = jnp.maximum(jnp.dot(v, w1, precision=lax.Precision.HIGHEST) + b1, 0.0)
        return jnp.dot(h, w2, precision=lax.Precision.HIGHEST) + b2

    ca = jax.nn.sigmoid(mlp(avg) + mlp(mx))[:, :, None, None]
    y = ca * x_nchw

    # spatial attention
    m_avg = jnp.mean(y, axis=1, keepdims=True)
    m_max = jnp.max(y, axis=1, keepdims=True)
    concat = jnp.concatenate([m_avg, m_max], axis=1)          # (B, 2, H, W)
    w = wsp[: 2 * ks * ks].reshape(1, 2, ks, ks)
    b = wsp[2 * ks * ks]
    conv = lax.conv_general_dilated(
        concat, w, window_strides=(1, 1), padding=((pad, pad), (pad, pad)),
        dimension_numbers=("NCHW", "OIHW", "NCHW"),
        precision=lax.Precision.HIGHEST) + b
    return jax.nn.sigmoid(conv) * y


if __name__ == "__main__":
    B, C, H, W = 2, 32, 16, 16           # reduction=16 -> 2 hidden channels; H*W=256
    key = jax.random.PRNGKey(0)
    kx, kp = jax.random.split(key)

    x = jax.random.normal(kx, (B, C, H, W), jnp.float32)
    params = init_cbam_params(kp, in_channels=C, reduction=16, spatial_kernel_size=3)

    out = jax.block_until_ready(jax.jit(cbam_forward)(x, params))
    ref = cbam_reference(x, params)

    assert out.shape == (B, C, H, W) and out.dtype == x.dtype
    # Tolerance covers MXU f32 pass-precision differences between the in-kernel
    # matmul-based MLP and XLA's dot/conv in the reference.
    assert jnp.allclose(out, ref, rtol=1e-3, atol=1e-3), "mismatch vs reference"
    print("KERNEL_OK")
</pallas_src>

<mosaic_0001>
module attributes {stable_mosaic.version = 11 : i64} {
  func.func @kernel(%arg0: i32, %arg1: memref<1x32x256xf32, #tpu.memory_space<vmem>>, %arg2: memref<32x2xf32, #tpu.memory_space<vmem>>, %arg3: memref<1x2xf32, #tpu.memory_space<vmem>>, %arg4: memref<2x32xf32, #tpu.memory_space<vmem>>, %arg5: memref<1x32xf32, #tpu.memory_space<vmem>>, %arg6: memref<19xf32, #tpu.memory_space<smem>>, %arg7: memref<1x256xi32, #tpu.memory_space<vmem>>, %arg8: memref<1x256xi32, #tpu.memory_space<vmem>>, %arg9: memref<1x32x256xf32, #tpu.memory_space<vmem>>, %arg10: memref<1x256xf32, #tpu.memory_space<vmem>>, %arg11: memref<1x256xf32, #tpu.memory_space<vmem>>, %arg12: memref<1x256xf32, #tpu.memory_space<vmem>>) attributes {dimension_semantics = [#tpu.dimension_semantics<parallel>], iteration_bounds = array<i64: 2>, scalar_prefetch = 0 : i64, scratch_operands = 3 : i64, tpu.core_type = #tpu.core_type<tc>, window_params = [{transform_indices = @transform_0, window_bounds = array<i64: 1, 32, 256>}, {pipeline_mode = #tpu.pipeline_mode<synchronous>, transform_indices = @transform_1, window_bounds = array<i64: 32, 2>}, {pipeline_mode = #tpu.pipeline_mode<synchronous>, transform_indices = @transform_2, window_bounds = array<i64: 1, 2>}, {pipeline_mode = #tpu.pipeline_mode<synchronous>, transform_indices = @transform_3, window_bounds = array<i64: 2, 32>}, {pipeline_mode = #tpu.pipeline_mode<synchronous>, transform_indices = @transform_4, window_bounds = array<i64: 1, 32>}, {transform_indices = @transform_5, window_bounds = array<i64: 19>}, {pipeline_mode = #tpu.pipeline_mode<synchronous>, transform_indices = @transform_6, window_bounds = array<i64: 1, 256>}, {pipeline_mode = #tpu.pipeline_mode<synchronous>, transform_indices = @transform_7, window_bounds = array<i64: 1, 256>}, {transform_indices = @transform_8, window_bounds = array<i64: 1, 32, 256>}]} {
    %cst = arith.constant 0.000000e+00 : f32
    %0 = vector.broadcast %cst : f32 to vector<1x32x256xf32>
    %cst_0 = arith.constant 0xFF800000 : f32
    %1 = vector.broadcast %cst_0 : f32 to vector<1x32x256xf32>
    %c0_i32 = arith.constant 0 : i32
    %c256_i32 = arith.constant 256 : i32
    %2 = arith.muli %c0_i32, %c256_i32 : i32
    %3 = tpu.assume_multiple %2, 128 : i32
    %c0 = arith.constant 0 : index
    %c0_1 = arith.constant 0 : index
    %4 = arith.index_cast %3 : i32 to index
    %5 = vector.load %arg1[%c0, %c0_1, %4] : memref<1x32x256xf32, #tpu.memory_space<vmem>>, vector<1x32x256xf32>
    %6 = arith.addf %0, %5 : vector<1x32x256xf32>
    %7 = arith.maximumf %1, %5 : vector<1x32x256xf32>
    %c1_i32 = arith.constant 1 : i32
    %cst_2 = arith.constant dense<0.000000e+00> : vector<1x32xf32>
    %8 = vector.multi_reduction <add>, %6, %cst_2 [2] : vector<1x32x256xf32> to vector<1x32xf32>
    %cst_3 = arith.constant dense<0xFF800000> : vector<1x32xf32>
    %9 = vector.multi_reduction <maximumf>, %7, %cst_3 [2] : vector<1x32x256xf32> to vector<1x32xf32>
    %cst_4 = arith.constant 3.906250e-03 : f32
    %10 = vector.broadcast %cst_4 : f32 to vector<1x32xf32>
    %11 = arith.mulf %8, %10 : vector<1x32xf32>
    %12 = tpu.concatenate %11, %9 in 0 : vector<1x32xf32>, vector<1x32xf32> -> vector<2x32xf32>
    %c0_5 = arith.constant 0 : index
    %c0_6 = arith.constant 0 : index
    %13 = vector.load %arg2[%c0_5, %c0_6] : memref<32x2xf32, #tpu.memory_space<vmem>>, vector<32x2xf32>
    %cst_7 = arith.constant dense<0.000000e+00> : vector<2x2xf32>
    %14 = tpu.matmul %12, %13, %cst_7 {dimension_numbers = #tpu.dot_dimension_numbers<[1], [0], [0], [1], [0, 0, 1, 1], [], []>} : vector<2x32xf32>, vector<32x2xf32>, vector<2x2xf32> -> vector<2x2xf32>
    %c0_8 = arith.constant 0 : index
    %c0_9 = arith.constant 0 : index
    %15 = vector.load %arg3[%c0_8, %c0_9] : memref<1x2xf32, #tpu.memory_space<vmem>>, vector<1x2xf32>
    %16 = vector.broadcast %15 : vector<1x2xf32> to vector<2x2xf32>
    %17 = arith.addf %14, %16 : vector<2x2xf32>
    %cst_10 = arith.constant 0.000000e+00 : f32
    %18 = vector.broadcast %cst_10 : f32 to vector<2x2xf32>
    %19 = arith.maximumf %17, %18 : vector<2x2xf32>
    %c0_11 = arith.constant 0 : index
    %c0_12 = arith.constant 0 : index
    %20 = vector.load %arg4[%c0_11, %c0_12] : memref<2x32xf32, #tpu.memory_space<vmem>>, vector<2x32xf32>
    %cst_13 = arith.constant dense<0.000000e+00> : vector<2x32xf32>
    %21 = tpu.matmul %19, %20, %cst_13 {dimension_numbers = #tpu.dot_dimension_numbers<[1], [0], [0], [1], [0, 0, 1, 1], [], []>} : vector<2x2xf32>, vector<2x32xf32>, vector<2x32xf32> -> vector<2x32xf32>
    %c0_14 = arith.constant 0 : index
    %c0_15 = arith.constant 0 : index
    %22 = vector.load %arg5[%c0_14, %c0_15] : memref<1x32xf32, #tpu.memory_space<vmem>>, vector<1x32xf32>
    %23 = vector.broadcast %22 : vector<1x32xf32> to vector<2x32xf32>
    %24 = arith.addf %21, %23 : vector<2x32xf32>
    %25 = vector.extract_strided_slice %24 {offsets = [0, 0], sizes = [1, 32], strides = [1, 1]} : vector<2x32xf32> to vector<1x32xf32>
    %26 = vector.extract_strided_slice %24 {offsets = [1, 0], sizes = [1, 32], strides = [1, 1]} : vector<2x32xf32> to vector<1x32xf32>
    %27 = arith.addf %25, %26 : vector<1x32xf32>
    %28 = arith.negf %27 : vector<1x32xf32>
    %29 = math.exp %28 : vector<1x32xf32>
    %cst_16 = arith.constant 1.000000e+00 : f32
    %30 = vector.broadcast %cst_16 : f32 to vector<1x32xf32>
    %31 = arith.addf %30, %29 : vector<1x32xf32>
    %32 = arith.divf %30, %31 : vector<1x32xf32>
    %33 = vector.shape_cast %32 : vector<1x32xf32> to vector<1x32x1xf32>
    %34 = vector.shape_cast %33 : vector<1x32x1xf32> to vector<1x32x1xf32>
    %35 = vector.broadcast %34 : vector<1x32x1xf32> to vector<1x32x256xf32>
    %c0_i32_17 = arith.constant 0 : i32
    %c256_i32_18 = arith.constant 256 : i32
    %36 = arith.muli %c0_i32_17, %c256_i32_18 : i32
    %37 = tpu.assume_multiple %36, 128 : i32
    %c0_19 = arith.constant 0 : index
    %c0_20 = arith.constant 0 : index
    %38 = arith.index_cast %37 : i32 to index
    %39 = vector.load %arg1[%c0_19, %c0_20, %38] : memref<1x32x256xf32, #tpu.memory_space<vmem>>, vector<1x32x256xf32>
    %40 = arith.mulf %39, %35 : vector<1x32x256xf32>
    %cst_21 = arith.constant dense<0.000000e+00> : vector<1x256xf32>
    %41 = vector.multi_reduction <add>, %40, %cst_21 [1] : vector<1x32x256xf32> to vector<1x256xf32>
    %cst_22 = arith.constant dense<0xFF800000> : vector<1x256xf32>
    %42 = vector.multi_reduction <maximumf>, %40, %cst_22 [1] : vector<1x32x256xf32> to vector<1x256xf32>
    %c0_23 = arith.constant 0 : index
    %43 = arith.index_cast %37 : i32 to index
    %44 = vector.load %arg10[%c0_23, %43] : memref<1x256xf32, #tpu.memory_space<vmem>>, vector<1x256xf32>
    tpu.vector_store %arg10[%c0_23, %43], %41 {strides = array<i32>} : memref<1x256xf32, #tpu.memory_space<vmem>>, vector<1x256xf32>,
    %c0_24 = arith.constant 0 : index
    %45 = arith.index_cast %37 : i32 to index
    %46 = vector.load %arg11[%c0_24, %45] : memref<1x256xf32, #tpu.memory_space<vmem>>, vector<1x256xf32>
    tpu.vector_store %arg11[%c0_24, %45], %42 {strides = array<i32>} : memref<1x256xf32, #tpu.memory_space<vmem>>, vector<1x256xf32>,
    %c1_i32_25 = arith.constant 1 : i32
    %c0_26 = arith.constant 0 : index
    %c0_27 = arith.constant 0 : index
    %47 = vector.load %arg7[%c0_26, %c0_27] : memref<1x256xi32, #tpu.memory_space<vmem>>, vector<1x256xi32>
    %c0_28 = arith.constant 0 : index
    %c0_29 = arith.constant 0 : index
    %48 = vector.load %arg8[%c0_28, %c0_29] : memref<1x256xi32, #tpu.memory_space<vmem>>, vector<1x256xi32>
    %c0_30 = arith.constant 0 : index
    %c0_31 = arith.constant 0 : index
    %49 = vector.load %arg10[%c0_30, %c0_31] : memref<1x256xf32, #tpu.memory_space<vmem>>, vector<1x256xf32>
    %cst_32 = arith.constant 3.125000e-02 : f32
    %50 = vector.broadcast %cst_32 : f32 to vector<1x256xf32>
    %51 = arith.mulf %49, %50 : vector<1x256xf32>
    %c0_33 = arith.constant 0 : index
    %c0_34 = arith.constant 0 : index
    %52 = vector.load %arg11[%c0_33, %c0_34] : memref<1x256xf32, #tpu.memory_space<vmem>>, vector<1x256xf32>
    %c1_i32_35 = arith.constant 1 : i32
    %53 = tpu.dynamic_rotate %51 by %c1_i32_35 dim 1 : vector<1x256xf32>, i32 -> vector<1x256xf32>
    %c-1_i32 = arith.constant -1 : i32
    %54 = vector.broadcast %c-1_i32 : i32 to vector<1x256xi32>
    %55 = arith.addi %48, %54 : vector<1x256xi32>
    %c0_i32_36 = arith.constant 0 : i32
    %56 = vector.broadcast %c0_i32_36 : i32 to vector<1x256xi32>
    %57 = arith.cmpi sge, %55, %56 : vector<1x256xi32>
    %c-1_i32_37 = arith.constant -1 : i32
    %58 = vector.broadcast %c-1_i32_37 : i32 to vector<1x256xi32>
    %59 = arith.addi %48, %58 : vector<1x256xi32>
    %c16_i32 = arith.constant 16 : i32
    %60 = vector.broadcast %c16_i32 : i32 to vector<1x256xi32>
    %61 = arith.cmpi slt, %59, %60 : vector<1x256xi32>
    %62 = arith.andi %57, %61 : vector<1x256xi1>
    %cst_38 = arith.constant 0.000000e+00 : f32
    %63 = vector.broadcast %cst_38 : f32 to vector<1x256xf32>
    %64 = arith.select %62, %53, %63 : vector<1x256xi1>, vector<1x256xf32>
    %c0_i32_39 = arith.constant 0 : i32
    %65 = vector.broadcast %c0_i32_39 : i32 to vector<1x256xi32>
    %66 = arith.addi %48, %65 : vector<1x256xi32>
    %c0_i32_40 = arith.constant 0 : i32
    %67 = vector.broadcast %c0_i32_40 : i32 to vector<1x256xi32>
    %68 = arith.cmpi sge, %66, %67 : vector<1x256xi32>
    %c0_i32_41 = arith.constant 0 : i32
    %69 = vector.broadcast %c0_i32_41 : i32 to vector<1x256xi32>
    %70 = arith.addi %48, %69 : vector<1x256xi32>
    %c16_i32_42 = arith.constant 16 : i32
    %71 = vector.broadcast %c16_i32_42 : i32 to vector<1x256xi32>
    %72 = arith.cmpi slt, %70, %71 : vector<1x256xi32>
    %73 = arith.andi %68, %72 : vector<1x256xi1>
    %cst_43 = arith.constant 0.000000e+00 : f32
    %74 = vector.broadcast %cst_43 : f32 to vector<1x256xf32>
    %75 = arith.select %73, %51, %74 : vector<1x256xi1>, vector<1x256xf32>
    %c255_i32 = arith.constant 255 : i32
    %76 = tpu.dynamic_rotate %51 by %c255_i32 dim 1 : vector<1x256xf32>, i32 -> vector<1x256xf32>
    %c1_i32_44 = arith.constant 1 : i32
    %77 = vector.broadcast %c1_i32_44 : i32 to vector<1x256xi32>
    %78 = arith.addi %48, %77 : vector<1x256xi32>
    %c0_i32_45 = arith.constant 0 : i32
    %79 = vector.broadcast %c0_i32_45 : i32 to vector<1x256xi32>
    %80 = arith.cmpi sge, %78, %79 : vector<1x256xi32>
    %c1_i32_46 = arith.constant 1 : i32
    %81 = vector.broadcast %c1_i32_46 : i32 to vector<1x256xi32>
    %82 = arith.addi %48, %81 : vector<1x256xi32>
    %c16_i32_47 = arith.constant 16 : i32
    %83 = vector.broadcast %c16_i32_47 : i32 to vector<1x256xi32>
    %84 = arith.cmpi slt, %82, %83 : vector<1x256xi32>
    %85 = arith.andi %80, %84 : vector<1x256xi1>
    %cst_48 = arith.constant 0.000000e+00 : f32
    %86 = vector.broadcast %cst_48 : f32 to vector<1x256xf32>
    %87 = arith.select %85, %76, %86 : vector<1x256xi1>, vector<1x256xf32>
    %c1_i32_49 = arith.constant 1 : i32
    %88 = tpu.dynamic_rotate %52 by %c1_i32_49 dim 1 : vector<1x256xf32>, i32 -> vector<1x256xf32>
    %c-1_i32_50 = arith.constant -1 : i32
    %89 = vector.broadcast %c-1_i32_50 : i32 to vector<1x256xi32>
    %90 = arith.addi %48, %89 : vector<1x256xi32>
    %c0_i32_51 = arith.constant 0 : i32
    %91 = vector.broadcast %c0_i32_51 : i32 to vector<1x256xi32>
    %92 = arith.cmpi sge, %90, %91 : vector<1x256xi32>
    %c-1_i32_52 = arith.constant -1 : i32
    %93 = vector.broadcast %c-1_i32_52 : i32 to vector<1x256xi32>
    %94 = arith.addi %48, %93 : vector<1x256xi32>
    %c16_i32_53 = arith.constant 16 : i32
    %95 = vector.broadcast %c16_i32_53 : i32 to vector<1x256xi32>
    %96 = arith.cmpi slt, %94, %95 : vector<1x256xi32>
    %97 = arith.andi %92, %96 : vector<1x256xi1>
    %cst_54 = arith.constant 0.000000e+00 : f32
    %98 = vector.broadcast %cst_54 : f32 to vector<1x256xf32>
    %99 = arith.select %97, %88, %98 : vector<1x256xi1>, vector<1x256xf32>
    %c0_i32_55 = arith.constant 0 : i32
    %100 = vector.broadcast %c0_i32_55 : i32 to vector<1x256xi32>
    %101 = arith.addi %48, %100 : vector<1x256xi32>
    %c0_i32_56 = arith.constant 0 : i32
    %102 = vector.broadcast %c0_i32_56 : i32 to vector<1x256xi32>
    %103 = arith.cmpi sge, %101, %102 : vector<1x256xi32>
    %c0_i32_57 = arith.constant 0 : i32
    %104 = vector.broadcast %c0_i32_57 : i32 to vector<1x256xi32>
    %105 = arith.addi %48, %104 : vector<1x256xi32>
    %c16_i32_58 = arith.constant 16 : i32
    %106 = vector.broadcast %c16_i32_58 : i32 to vector<1x256xi32>
    %107 = arith.cmpi slt, %105, %106 : vector<1x256xi32>
    %108 = arith.andi %103, %107 : vector<1x256xi1>
    %cst_59 = arith.constant 0.000000e+00 : f32
    %109 = vector.broadcast %cst_59 : f32 to vector<1x256xf32>
    %110 = arith.select %108, %52, %109 : vector<1x256xi1>, vector<1x256xf32>
    %c255_i32_60 = arith.constant 255 : i32
    %111 = tpu.dynamic_rotate %52 by %c255_i32_60 dim 1 : vector<1x256xf32>, i32 -> vector<1x256xf32>
    %c1_i32_61 = arith.constant 1 : i32
    %112 = vector.broadcast %c1_i32_61 : i32 to vector<1x256xi32>
    %113 = arith.addi %48, %112 : vector<1x256xi32>
    %c0_i32_62 = arith.constant 0 : i32
    %114 = vector.broadcast %c0_i32_62 : i32 to vector<1x256xi32>
    %115 = arith.cmpi sge, %113, %114 : vector<1x256xi32>
    %c1_i32_63 = arith.constant 1 : i32
    %116 = vector.broadcast %c1_i32_63 : i32 to vector<1x256xi32>
    %117 = arith.addi %48, %116 : vector<1x256xi32>
    %c16_i32_64 = arith.constant 16 : i32
    %118 = vector.broadcast %c16_i32_64 : i32 to vector<1x256xi32>
    %119 = arith.cmpi slt, %117, %118 : vector<1x256xi32>
    %120 = arith.andi %115, %119 : vector<1x256xi1>
    %cst_65 = arith.constant 0.000000e+00 : f32
    %121 = vector.broadcast %cst_65 : f32 to vector<1x256xf32>
    %122 = arith.select %120, %111, %121 : vector<1x256xi1>, vector<1x256xf32>
    %cst_66 = arith.constant 0.000000e+00 : f32
    %123 = vector.broadcast %cst_66 : f32 to vector<1x256xf32>
    %cst_67 = arith.constant 0.000000e+00 : f32
    %124 = vector.broadcast %cst_67 : f32 to vector<1x256xf32>
    %c0_68 = arith.constant 0 : index
    %125 = memref.load %arg6[%c0_68] : memref<19xf32, #tpu.memory_space<smem>>
    %126 = vector.broadcast %125 : f32 to vector<1x256xf32>
    %127 = arith.mulf %64, %126 : vector<1x256xf32>
    %128 = arith.addf %124, %127 : vector<1x256xf32>
    %c1 = arith.constant 1 : index
    %129 = memref.load %arg6[%c1] : memref<19xf32, #tpu.memory_space<smem>>
    %130 = vector.broadcast %129 : f32 to vector<1x256xf32>
    %131 = arith.mulf %75, %130 : vector<1x256xf32>
    %132 = arith.addf %128, %131 : vector<1x256xf32>
    %c2 = arith.constant 2 : index
    %133 = memref.load %arg6[%c2] : memref<19xf32, #tpu.memory_space<smem>>
    %134 = vector.broadcast %133 : f32 to vector<1x256xf32>
    %135 = arith.mulf %87, %134 : vector<1x256xf32>
    %136 = arith.addf %132, %135 : vector<1x256xf32>
    %c9 = arith.constant 9 : index
    %137 = memref.load %arg6[%c9] : memref<19xf32, #tpu.memory_space<smem>>
    %138 = vector.broadcast %137 : f32 to vector<1x256xf32>
    %139 = arith.mulf %99, %138 : vector<1x256xf32>
    %140 = arith.addf %136, %139 : vector<1x256xf32>
    %c10 = arith.constant 10 : index
    %141 = memref.load %arg6[%c10] : memref<19xf32, #tpu.memory_space<smem>>
    %142 = vector.broadcast %141 : f32 to vector<1x256xf32>
    %143 = arith.mulf %110, %142 : vector<1x256xf32>
    %144 = arith.addf %140, %143 : vector<1x256xf32>
    %c11 = arith.constant 11 : index
    %145 = memref.load %arg6[%c11] : memref<19xf32, #tpu.memory_space<smem>>
    %146 = vector.broadcast %145 : f32 to vector<1x256xf32>
    %147 = arith.mulf %122, %146 : vector<1x256xf32>
    %148 = arith.addf %144, %147 : vector<1x256xf32>
    %c16_i32_69 = arith.constant 16 : i32
    %149 = tpu.dynamic_rotate %148 by %c16_i32_69 dim 1 : vector<1x256xf32>, i32 -> vector<1x256xf32>
    %c-1_i32_70 = arith.constant -1 : i32
    %150 = vector.broadcast %c-1_i32_70 : i32 to vector<1x256xi32>
    %151 = arith.addi %47, %150 : vector<1x256xi32>
    %c0_i32_71 = arith.constant 0 : i32
    %152 = vector.broadcast %c0_i32_71 : i32 to vector<1x256xi32>
    %153 = arith.cmpi sge, %151, %152 : vector<1x256xi32>
    %c-1_i32_72 = arith.constant -1 : i32
    %154 = vector.broadcast %c-1_i32_72 : i32 to vector<1x256xi32>
    %155 = arith.addi %47, %154 : vector<1x256xi32>
    %c16_i32_73 = arith.constant 16 : i32
    %156 = vector.broadcast %c16_i32_73 : i32 to vector<1x256xi32>
    %157 = arith.cmpi slt, %155, %156 : vector<1x256xi32>
    %158 = arith.andi %153, %157 : vector<1x256xi1>
    %cst_74 = arith.constant 0.000000e+00 : f32
    %159 = vector.broadcast %cst_74 : f32 to vector<1x256xf32>
    %160 = arith.select %158, %149, %159 : vector<1x256xi1>, vector<1x256xf32>
    %161 = arith.addf %123, %160 : vector<1x256xf32>
    %cst_75 = arith.constant 0.000000e+00 : f32
    %162 = vector.broadcast %cst_75 : f32 to vector<1x256xf32>
    %c3 = arith.constant 3 : index
    %163 = memref.load %arg6[%c3] : memref<19xf32, #tpu.memory_space<smem>>
    %164 = vector.broadcast %163 : f32 to vector<1x256xf32>
    %165 = arith.mulf %64, %164 : vector<1x256xf32>
    %166 = arith.addf %162, %165 : vector<1x256xf32>
    %c4 = arith.constant 4 : index
    %167 = memref.load %arg6[%c4] : memref<19xf32, #tpu.memory_space<smem>>
    %168 = vector.broadcast %167 : f32 to vector<1x256xf32>
    %169 = arith.mulf %75, %168 : vector<1x256xf32>
    %170 = arith.addf %166, %169 : vector<1x256xf32>
    %c5 = arith.constant 5 : index
    %171 = memref.load %arg6[%c5] : memref<19xf32, #tpu.memory_space<smem>>
    %172 = vector.broadcast %171 : f32 to vector<1x256xf32>
    %173 = arith.mulf %87, %172 : vector<1x256xf32>
    %174 = arith.addf %170, %173 : vector<1x256xf32>
    %c12 = arith.constant 12 : index
    %175 = memref.load %arg6[%c12] : memref<19xf32, #tpu.memory_space<smem>>
    %176 = vector.broadcast %175 : f32 to vector<1x256xf32>
    %177 = arith.mulf %99, %176 : vector<1x256xf32>
    %178 = arith.addf %174, %177 : vector<1x256xf32>
    %c13 = arith.constant 13 : index
    %179 = memref.load %arg6[%c13] : memref<19xf32, #tpu.memory_space<smem>>
    %180 = vector.broadcast %179 : f32 to vector<1x256xf32>
    %181 = arith.mulf %110, %180 : vector<1x256xf32>
    %182 = arith.addf %178, %181 : vector<1x256xf32>
    %c14 = arith.constant 14 : index
    %183 = memref.load %arg6[%c14] : memref<19xf32, #tpu.memory_space<smem>>
    %184 = vector.broadcast %183 : f32 to vector<1x256xf32>
    %185 = arith.mulf %122, %184 : vector<1x256xf32>
    %186 = arith.addf %182, %185 : vector<1x256xf32>
    %c0_i32_76 = arith.constant 0 : i32
    %187 = vector.broadcast %c0_i32_76 : i32 to vector<1x256xi32>
    %188 = arith.addi %47, %187 : vector<1x256xi32>
    %c0_i32_77 = arith.constant 0 : i32
    %189 = vector.broadcast %c0_i32_77 : i32 to vector<1x256xi32>
    %190 = arith.cmpi sge, %188, %189 : vector<1x256xi32>
    %c0_i32_78 = arith.constant 0 : i32
    %191 = vector.broadcast %c0_i32_78 : i32 to vector<1x256xi32>
    %192 = arith.addi %47, %191 : vector<1x256xi32>
    %c16_i32_79 = arith.constant 16 : i32
    %193 = vector.broadcast %c16_i32_79 : i32 to vector<1x256xi32>
    %194 = arith.cmpi slt, %192, %193 : vector<1x256xi32>
    %195 = arith.andi %190, %194 : vector<1x256xi1>
    %cst_80 = arith.constant 0.000000e+00 : f32
    %196 = vector.broadcast %cst_80 : f32 to vector<1x256xf32>
    %197 = arith.select %195, %186, %196 : vector<1x256xi1>, vector<1x256xf32>
    %198 = arith.addf %161, %197 : vector<1x256xf32>
    %cst_81 = arith.constant 0.000000e+00 : f32
    %199 = vector.broadcast %cst_81 : f32 to vector<1x256xf32>
    %c6 = arith.constant 6 : index
    %200 = memref.load %arg6[%c6] : memref<19xf32, #tpu.memory_space<smem>>
    %201 = vector.broadcast %200 : f32 to vector<1x256xf32>
    %202 = arith.mulf %64, %201 : vector<1x256xf32>
    %203 = arith.addf %199, %202 : vector<1x256xf32>
    %c7 = arith.constant 7 : index
    %204 = memref.load %arg6[%c7] : memref<19xf32, #tpu.memory_space<smem>>
    %205 = vector.broadcast %204 : f32 to vector<1x256xf32>
    %206 = arith.mulf %75, %205 : vector<1x256xf32>
    %207 = arith.addf %203, %206 : vector<1x256xf32>
    %c8 = arith.constant 8 : index
    %208 = memref.load %arg6[%c8] : memref<19xf32, #tpu.memory_space<smem>>
    %209 = vector.broadcast %208 : f32 to vector<1x256xf32>
    %210 = arith.mulf %87, %209 : vector<1x256xf32>
    %211 = arith.addf %207, %210 : vector<1x256xf32>
    %c15 = arith.constant 15 : index
    %212 = memref.load %arg6[%c15] : memref<19xf32, #tpu.memory_space<smem>>
    %213 = vector.broadcast %212 : f32 to vector<1x256xf32>
    %214 = arith.mulf %99, %213 : vector<1x256xf32>
    %215 = arith.addf %211, %214 : vector<1x256xf32>
    %c16 = arith.constant 16 : index
    %216 = memref.load %arg6[%c16] : memref<19xf32, #tpu.memory_space<smem>>
    %217 = vector.broadcast %216 : f32 to vector<1x256xf32>
    %218 = arith.mulf %110, %217 : vector<1x256xf32>
    %219 = arith.addf %215, %218 : vector<1x256xf32>
    %c17 = arith.constant 17 : index
    %220 = memref.load %arg6[%c17] : memref<19xf32, #tpu.memory_space<smem>>
    %221 = vector.broadcast %220 : f32 to vector<1x256xf32>
    %222 = arith.mulf %122, %221 : vector<1x256xf32>
    %223 = arith.addf %219, %222 : vector<1x256xf32>
    %c240_i32 = arith.constant 240 : i32
    %224 = tpu.dynamic_rotate %223 by %c240_i32 dim 1 : vector<1x256xf32>, i32 -> vector<1x256xf32>
    %c1_i32_82 = arith.constant 1 : i32
    %225 = vector.broadcast %c1_i32_82 : i32 to vector<1x256xi32>
    %226 = arith.addi %47, %225 : vector<1x256xi32>
    %c0_i32_83 = arith.constant 0 : i32
    %227 = vector.broadcast %c0_i32_83 : i32 to vector<1x256xi32>
    %228 = arith.cmpi sge, %226, %227 : vector<1x256xi32>
    %c1_i32_84 = arith.constant 1 : i32
    %229 = vector.broadcast %c1_i32_84 : i32 to vector<1x256xi32>
    %230 = arith.addi %47, %229 : vector<1x256xi32>
    %c16_i32_85 = arith.constant 16 : i32
    %231 = vector.broadcast %c16_i32_85 : i32 to vector<1x256xi32>
    %232 = arith.cmpi slt, %230, %231 : vector<1x256xi32>
    %233 = arith.andi %228, %232 : vector<1x256xi1>
    %cst_86 = arith.constant 0.000000e+00 : f32
    %234 = vector.broadcast %cst_86 : f32 to vector<1x256xf32>
    %235 = arith.select %233, %224, %234 : vector<1x256xi1>, vector<1x256xf32>
    %236 = arith.addf %198, %235 : vector<1x256xf32>
    %c18 = arith.constant 18 : index
    %237 = memref.load %arg6[%c18] : memref<19xf32, #tpu.memory_space<smem>>
    %238 = vector.broadcast %237 : f32 to vector<1x256xf32>
    %239 = arith.addf %236, %238 : vector<1x256xf32>
    %240 = arith.negf %239 : vector<1x256xf32>
    %241 = math.exp %240 : vector<1x256xf32>
    %cst_87 = arith.constant 1.000000e+00 : f32
    %242 = vector.broadcast %cst_87 : f32 to vector<1x256xf32>
    %243 = arith.addf %242, %241 : vector<1x256xf32>
    %244 = arith.divf %242, %243 : vector<1x256xf32>
    %c0_88 = arith.constant 0 : index
    %c0_89 = arith.constant 0 : index
    %245 = vector.load %arg12[%c0_88, %c0_89] : memref<1x256xf32, #tpu.memory_space<vmem>>, vector<1x256xf32>
    tpu.vector_store %arg12[%c0_88, %c0_89], %244 {strides = array<i32>} : memref<1x256xf32, #tpu.memory_space<vmem>>, vector<1x256xf32>,
    %246 = vector.shape_cast %32 : vector<1x32xf32> to vector<1x32x1xf32>
    %247 = vector.shape_cast %246 : vector<1x32x1xf32> to vector<1x32x1xf32>
    %248 = vector.broadcast %247 : vector<1x32x1xf32> to vector<1x32x256xf32>
    %c0_i32_90 = arith.constant 0 : i32
    %c256_i32_91 = arith.constant 256 : i32
    %249 = arith.muli %c0_i32_90, %c256_i32_91 : i32
    %250 = tpu.assume_multiple %249, 128 : i32
    %c0_92 = arith.constant 0 : index
    %c0_93 = arith.constant 0 : index
    %251 = arith.index_cast %250 : i32 to index
    %252 = vector.load %arg1[%c0_92, %c0_93, %251] : memref<1x32x256xf32, #tpu.memory_space<vmem>>, vector<1x32x256xf32>
    %c0_94 = arith.constant 0 : index
    %253 = arith.index_cast %250 : i32 to index
    %254 = vector.load %arg12[%c0_94, %253] : memref<1x256xf32, #tpu.memory_space<vmem>>, vector<1x256xf32>
    %255 = arith.mulf %252, %248 : vector<1x32x256xf32>
    %256 = vector.shape_cast %254 : vector<1x256xf32> to vector<1x1x256xf32>
    %257 = vector.broadcast %256 : vector<1x1x256xf32> to vector<1x32x256xf32>
    %258 = arith.mulf %255, %257 : vector<1x32x256xf32>
    %c0_95 = arith.constant 0 : index
    %c0_96 = arith.constant 0 : index
    %259 = arith.index_cast %250 : i32 to index
    %260 = vector.load %arg9[%c0_95, %c0_96, %259] : memref<1x32x256xf32, #tpu.memory_space<vmem>>, vector<1x32x256xf32>
    tpu.vector_store %arg9[%c0_95, %c0_96, %259], %258 {strides = array<i32>} : memref<1x32x256xf32, #tpu.memory_space<vmem>>, vector<1x32x256xf32>,
    %c1_i32_97 = arith.constant 1 : i32
    return
  }
  func.func @transform_0(%arg0: i32) -> (i32, i32, i32) {
    %c0_i32 = arith.constant 0 : i32
    %c0_i32_0 = arith.constant 0 : i32
    %c0_i32_1 = arith.constant 0 : i32
    return %arg0, %c0_i32, %c0_i32_0 : i32, i32, i32
  }
  func.func @transform_1(%arg0: i32) -> (i32, i32) {
    %c0_i32 = arith.constant 0 : i32
    %c0_i32_0 = arith.constant 0 : i32
    %c0_i32_1 = arith.constant 0 : i32
    return %c0_i32, %c0_i32_0 : i32, i32
  }
  func.func @transform_2(%arg0: i32) -> (i32, i32) {
    %c0_i32 = arith.constant 0 : i32
    %c0_i32_0 = arith.constant 0 : i32
    %c0_i32_1 = arith.constant 0 : i32
    return %c0_i32, %c0_i32_0 : i32, i32
  }
  func.func @transform_3(%arg0: i32) -> (i32, i32) {
    %c0_i32 = arith.constant 0 : i32
    %c0_i32_0 = arith.constant 0 : i32
    %c0_i32_1 = arith.constant 0 : i32
    return %c0_i32, %c0_i32_0 : i32, i32
  }
  func.func @transform_4(%arg0: i32) -> (i32, i32) {
    %c0_i32 = arith.constant 0 : i32
    %c0_i32_0 = arith.constant 0 : i32
    %c0_i32_1 = arith.constant 0 : i32
    return %c0_i32, %c0_i32_0 : i32, i32
  }
  func.func @transform_5(%arg0: i32) -> i32 {
    %c0_i32 = arith.constant 0 : i32
    %c0_i32_0 = arith.constant 0 : i32
    return %c0_i32 : i32
  }
  func.func @transform_6(%arg0: i32) -> (i32, i32) {
    %c0_i32 = arith.constant 0 : i32
    %c0_i32_0 = arith.constant 0 : i32
    %c0_i32_1 = arith.constant 0 : i32
    return %c0_i32, %c0_i32_0 : i32, i32
  }
  func.func @transform_7(%arg0: i32) -> (i32, i32) {
    %c0_i32 = arith.constant 0 : i32
    %c0_i32_0 = arith.constant 0 : i32
    %c0_i32_1 = arith.constant 0 : i32
    return %c0_i32, %c0_i32_0 : i32, i32
  }
  func.func @transform_8(%arg0: i32) -> (i32, i32, i32) {
    %c0_i32 = arith.constant 0 : i32
    %c0_i32_0 = arith.constant 0 : i32
    %c0_i32_1 = arith.constant 0 : i32
    return %arg0, %c0_i32, %c0_i32_0 : i32, i32, i32
  }
}

</mosaic_0001>

<bundles_post_ra>
// kernel: cbam_forward.1
= control target key start
LH: loop header
LB: loop body
LE: loop exit
PB: predicated region body
PF: predicated region fallthrough
CT: control target
= control target key end

     0   :  { %13 = vsyncpa [#allocation6], 0  ;;  %s1054_s27 = smov 0   ;;  %s1333_s0 = inlined_call_operand.vmem [shape: f32[2,32,256], index: 0, kind: input, shape index: {}]   ;;  %s1334_s1 = inlined_call_operand.vmem [shape: f32[32,2], index: 1, kind: input, shape index: {}]   ;;  %s1335_s2 = inlined_call_operand.vmem [shape: f32[1,2], index: 2, kind: input, shape index: {}]   ;;  %s1336_s3 = inlined_call_operand.vmem [shape: f32[2,32], index: 3, kind: input, shape index: {}]   ;;  %s1337_s4 = inlined_call_operand.vmem [shape: f32[1,32], index: 4, kind: input, shape index: {}]   ;;  %s1338_s5 = inlined_call_operand.vmem [shape: f32[19], index: 5, kind: input, shape index: {}]   ;;  %s1339_s6 = inlined_call_operand.vmem [shape: s32[1,256], index: 6, kind: input, shape index: {}]   ;;  %s1340_s7 = inlined_call_operand.vmem [shape: s32[1,256], index: 7, kind: input, shape index: {}]   ;;  %s1341_s8 = inlined_call_operand.vmem [shape: f32[2,32,256], index: 8, kind: output, shape index: {}]  }
   0x1 LB: > { %s901_s28 = sadd.s32 4294967295, %s1002_s27   ;;  %p903_p0 = scmp.ge.s32.totalorder %s1002_s27, 1  ;;  %s1002_s27 = sphi %s1054_s27, %s19_s27  }
   0x2   : > { %p223_p1 = scmp.lt.s32.totalorder %s1002_s27, 3  ;;  %s247_s9 = sshll.u32 %s1338_s5, 4  ;;  %s248_s9 = int_to_ptr.vmem [resolvable:$true] %s247_s9 }
   0x3   : > { %p947_p3 = scmp.eq.s32.totalorder %s901_s28, 0  ;;  %s1004_s10 = smov [#allocation5]  }
   0x4   : > { %p224_p2 = pnand %p903_p0, %p223_p1 }
   0x6   : > { %p943_p4 = pneg %p224_p2  ;;  %274 = sbr.rel (%p224_p2) target bundleno = 917 (0x395), region = 52 }
   0x8   : > { %p944_p5 = pnand %p947_p3, %p943_p4 }
   0xa   : > { %946 = dma.vmem_to_smem (!%p944_p5), %s248_s9, 16, %s1004_s10, [#allocation6]  }
   0xb   : > { %997 = dma.done.wait (%p947_p3), [#allocation6], 16  }
   0xc   : > { %999 = vsyncadd (%p947_p3), [#allocation6], 4294967280 }
   0xd   : > { %281 = sfence }
   0xe   : > { %p310_p6 = scmp.lt.s32.totalorder %s901_s28, 1  ;;  %v401_v16 = vld [vmem:[%s1334_s1 + $0x18] sm:$0xff]  ;;  %v400_v17 = vld [vmem:[%s1334_s1 + $0x10] sm:$0xff]  ;;  %v399_v18 = vld [vmem:[%s1334_s1 + $0x8] sm:$0xff]  ;;  %v368_v23 = vlaneseq  ;;  %vm373_vm0 = vcmask 130112   ;;  %vm377_vm1 = vcmask 195712  }
   0xf   : > { %422 = vmatpush.msra.mxu0 %v401_v16  ;;  %v398_v19 = vld [vmem:[%s1334_s1] sm:$0xff]  ;;  %vm381_vm2 = vcmask 261312   ;;  %vm396_vm3 = vcmask 1040384   ;;  %vm406_vm4 = vcmask 261120   ;;  %vm440_vm5 = vcmask 1041408   ;;  %s1005_s9 = smov 1  }
  0x10   : > { %s1351_s28 = smov (!%p310_p6, %s901_s28), 1  ;;  %v1118_v24 = vand.u32 127, %v368_v23  ;;  %v431_v52 = vld [vmem:[%s1336_s3] sm:$0x3]  ;;  %vm436_vm6 = vcmask 15360   ;;  %v489_v57 = vshrl.u32 %v368_v23, 7 }
  0x11   : > { %s937_s11 = sshll.u32 %s1351_s28, 6  ;;  %423 = vmatpush.msra.mxu0 %v400_v17  ;;  %913 = vmatpush.msk.msra.mxu1 %vm440_vm5, %v431_v52  ;;  %v967_v53 = vld [vmem:[%s1335_s2] ss:$0 sm:$0xff]  ;;  %vm1177_vm11 = vcmp.lt.s32.totalorder %v368_v23, 256  ;;  %s1006_s10 = smov 127  }
  0x12   : > { %s314_s14 = scalar_lea.vmem %s1333_s0, %s937_s11  ;;  %v371_v27 = vadd.s32 4294967288, %v1118_v24  ;;  %v375_v30 = vadd.s32 4294967280, %v1118_v24  ;;  %v379_v35 = vadd.s32 4294967272, %v1118_v24  ;;  %962 = vset.pattern.permute.xlu2 %v489_v57  ;;  %v502_v58 = vadd.s32 16, %v489_v57  ;;  %v968_v60 = vld [vmem:[%s1337_s4] ss:$0 sm:$0xff] }
  0x13   : > { %v1073_v0 = vld [vmem:[%s314_s14] sm:$0xff]  ;;  %v1075_v1 = vld [vmem:[%s314_s14 + $0x8] sm:$0xff]  ;;  %v1087_v7 = vld [vmem:[%s314_s14 + $0x10] sm:$0xff]  ;;  %424 = vmatpush.msra.mxu0 %v399_v18  ;;  %v496_v59 = vadd.s32 8, %v489_v57  ;;  %s1191_s12 = sld [smem:[#allocation5 + $0xd]]  ;;  %vm586_vm14 = vcmp.lt.s32.totalorder %v1118_v24, 1 }
  0x14   : > { %v1077_v2 = vld [vmem:[%s314_s14 + $0x20] sm:$0xff]  ;;  %v348_v3 = vmax.f32 %v1073_v0, %v1075_v1  ;;  %v336_v4 = vadd.f32 %v1075_v1, %v1073_v0  ;;  %v1083_v5 = vld [vmem:[%s314_s14 + $0x28] sm:$0xff]  ;;  %v1089_v8 = vld [vmem:[%s314_s14 + $0x18] sm:$0xff]  ;;  %964 = vset.pattern.permute.xlu1 %v502_v58  ;;  %s1195_s13 = sld [smem:[#allocation5 + $0x10]] }
  0x15   : > { %v342_v6 = vadd.f32 %v1083_v5, %v1077_v2  ;;  %v1091_v9 = vld [vmem:[%s314_s14 + $0x30] sm:$0xff]  ;;  %v1093_v10 = vld [vmem:[%s314_s14 + $0x38] sm:$0xff]  ;;  %v351_v11 = vmax.f32 %v1087_v7, %v1089_v8  ;;  %v339_v12 = vadd.f32 %v1089_v8, %v1087_v7  ;;  %v354_v14 = vmax.f32 %v1077_v2, %v1083_v5  ;;  %425 = vmatpush.msra.mxu0 %v398_v19  ;;  %s1197_s14 = sld [smem:[#allocation5 + $0xa]] }
  0x16   : > { %349 = vmax.xlane.f32.xlu2 %v348_v3  ;;  %337 = vadd.xlane.f32.xlu0 %v336_v4  ;;  %v345_v13 = vadd.f32 %v1093_v10, %v1091_v9  ;;  %v357_v15 = vmax.f32 %v1091_v9, %v1093_v10  ;;  %s1199_s15 = sld [smem:[#allocation5 + $0x4]] }
  0x17   : > { %343 = vadd.xlane.f32.xlu1 %v342_v6  ;;  %963 = vset.pattern.permute.xlu0 %v496_v59  ;;  %s1201_s16 = sld [smem:[#allocation5 + $0x3]] }
  0x18   : > { %s1206_s19 = sld [smem:[#allocation5 + $0x1]] }
  0x19   : > { %s1208_s20 = sld [smem:[#allocation5 + $0x7]] }
  0x1a   : > { %s1210_s21 = sld [smem:[#allocation5]] }
  0x1b   : > { %s1213_s22 = sld [smem:[#allocation5 + $0x6]] }
  0x1c   : > { %s1215_s23 = sld [smem:[#allocation5 + $0x9]] }
  0x1d   : > { %s1219_s24 = sld [smem:[#allocation5 + $0x2]] }
  0x1e   : > { %352 = vmax.xlane.f32.xlu2 %v351_v11  ;;  %340 = vadd.xlane.f32.xlu0 %v339_v12  ;;  %s1228_s25 = sld [smem:[#allocation5 + $0x5]] }
  0x1f   : > { %346 = vadd.xlane.f32.xlu1 %v345_v13  ;;  %s1235_s26 = sld [smem:[#allocation5 + $0x8]] }
  0x20   : > { %s1241_s29 = sld [smem:[#allocation5 + $0xc]] }
  0x21   : > { %s1244_s30 = sld [smem:[#allocation5 + $0xf]] }
  0x22   : > { %s933_s17 = sld [smem:[#allocation5 + $0x12]] }
  0x26   : > { %355 = vmax.xlane.f32.xlu0 %v354_v14 }
  0x27   : > { %358 = vmax.xlane.f32.xlu1 %v357_v15 }
  0x89   : > { %v338_v20 = vpop.xlane.xlu0 %337  ;;  %v350_v21 = vpop.xlane.xlu2 %349 }
  0x8a   : > { %v344_v22 = vpop.xlane.xlu1 %343  ;;  %v360_v25 = vmul.f32 0.00390625, %v338_v20  ;;  %v388_v37 = vperm.slane %v350_v21, %v1118_v24 }
  0x8b   : > { %v362_v31 = vmul.f32 0.00390625, %v344_v22 }
  0x8c   : > { %v370_v34 = vperm.slane %v360_v25, %v1118_v24  ;;  %v508_v25 = vadd.s32 24, %v489_v57 }
  0x8d   : > { %v376_v40 = vperm.slane %v362_v31, %v375_v30 }
  0x91   : > { %v341_v26 = vpop.xlane.xlu0 %340  ;;  %v353_v32 = vpop.xlane.xlu2 %352 }
  0x92   : > { %v361_v28 = vmul.f32 0.00390625, %v341_v26  ;;  %v347_v29 = vpop.xlane.xlu1 %346  ;;  %v389_v38 = vperm.slane %v353_v32, %v371_v27 }
  0x93   : > { %v363_v36 = vmul.f32 0.00390625, %v347_v29 }
  0x94   : > { %v372_v33 = vperm.slane %v361_v28, %v371_v27  ;;  %v390_v46 = vsel %vm373_vm0, %v389_v38, %v388_v37 }
  0x95   : > { %v380_v41 = vperm.slane %v363_v36, %v379_v35 }
  0x96   : > { %v374_v39 = vsel %vm373_vm0, %v372_v33, %v370_v34 }
  0x97   : > { %v378_v45 = vsel %vm377_vm1, %v376_v40, %v374_v39 }
  0x98   : > { %v382_v49 = vsel %vm381_vm2, %v380_v41, %v378_v45 }
  0x99   : > { %v356_v42 = vpop.xlane.xlu0 %355 }
  0x9a   : > { %v391_v43 = vperm.slane %v356_v42, %v375_v30  ;;  %v359_v44 = vpop.xlane.xlu1 %358 }
  0x9b   : > { %v393_v47 = vperm.slane %v359_v44, %v379_v35 }
  0x9c   : > { %v392_v48 = vsel %vm377_vm1, %v391_v43, %v390_v46 }
  0x9d   : > { %v394_v50 = vsel %vm381_vm2, %v393_v47, %v392_v48 }
  0x9e   : > { %v397_v51 = vsel %vm396_vm3, %v382_v49, %v394_v50 }
  0x9f   : > { %912 = vmatmul.msk.f32.vlgmr.msra.gmra.mxu0 %vm406_vm4, %v397_v51  ;;  %vm607_vm4 = vcmp.lt.s32.totalorder %v1118_v24, 127 }
 0x11c   : > { %v427_v54 = vpop.f32.mrf.mxu0 }
 0x11d   : > { %v428_v55 = vadd.f32 %v967_v53, %v427_v54 }
 0x11f   : > { %v430_v56 = vmax.f32 %v428_v55, 0.0 }
 0x121   : > { %914 = vmatmul.msk.f32.vlgmr.msra.gmra.mxu1 %vm436_vm6, %v430_v56 }
 0x19e   : > { %v461_v61 = vpop.f32.mrf.mxu1 }
 0x19f   : > { %v462_v62 = vadd.f32 %v968_v60, %v461_v61 }
 0x1a1   : > { %v465_v63 = vrot.slane %v462_v62, 1 }
 0x1a3   : > { %v467_v3 = vadd.f32 %v465_v63, %v462_v62 }
 0x1a5   : > { %v915_v4 = vmul.f32 -1.442695, %v467_v3 }
 0x1a7   : > { %969 = vpow2.f32 %v915_v4 }
 0x1ad   : > { %v970_v6 = vpop.eup %969 }
 0x1ae   : > { %v471_v11 = vadd.f32 1.0, %v970_v6 }
 0x1b0   : > { %971 = vrcp.f32 %v471_v11  ;;  %v483_v15 = vand.u32 2147483648, %v471_v11  ;;  %v481_v17 = vand.u32 2147483647, %v471_v11  ;;  %vm477_vm8 = vweird.f32 %v471_v11 }
 0x1b2   : > { %v484_v19 = vor.u32 1.1754944e-38, %v483_v15  ;;  %vm482_vm10 = vcmp.eq.f32.partialorder %v481_v17, 8.507059e+37 }
 0x1b6   : > { %v972_v12 = vpop.eup %971 }
 0x1b7   : > { %v473_v13 = vmul.f32 %v972_v12, %v471_v11  ;;  %vm478_vm7 = vweird.f32 %v972_v12 }
 0x1b8   : > { %vm479_vm9 = vmor %vm477_vm8, %vm478_vm7  ;;  %vm759_vm8 = vcmp.lt.s32.totalorder %v1118_v24, 112 }
 0x1b9   : > { %v474_v14 = vsub.f32 1.0, %v473_v13 }
 0x1bb   : > { %v475_v16 = vmul.f32 %v972_v12, %v474_v14 }
 0x1bd   : > { %v476_v18 = vadd.f32 %v972_v12, %v475_v16 }
 0x1bf   : > { %v480_v20 = vsel %vm479_vm9, %v972_v12, %v476_v18  ;;  %vm683_vm9 = vcmp.lt.s32.totalorder %v1118_v24, 16 }
 0x1c0   : > { %v485_v21 = vsel %vm482_vm10, %v484_v19, %v480_v20 }
 0x1c1   : > { %v487_v22 = vperm.slane %v485_v21, 0 }
 0x1c3   : > { %504 = vperm.xlu1 %964, %v487_v22   ;;  %498 = vperm.xlu0 %963, %v487_v22  }
 0x1c4   : > { %492 = vperm.xlu2 %962, %v487_v22  }
 0x1cb   : > { %966 = vset.pattern.permute.xlu0 %v508_v25 }
 0x1cc   : > { %965 = vset.pattern.permute.xlu2 %v508_v25  ;;  %v573_v25 = vld [vmem:[%s1340_s7] sm:$0x3] }
 0x1cd   : > { %vm599_vm12 = vcmp.ge.s32.totalorder %v573_v25, 0  ;;  %vm600_vm13 = vcmp.lt.s32.totalorder %v573_v25, 16 }
 0x1ce   : > { %vm1221_vm1 = vmand %vm599_vm12, %vm600_vm13 }
 0x1d4   : > { %510 = vperm.xlu2 %965, %v487_v22  }
 0x21e   : > { %v493_v26 = vpop.permute.xlu2 %492 }
 0x21f   : > { %v1137_v30 = vmul.f32 %v493_v26, %v1073_v0  ;;  %v1140_v31 = vmul.f32 %v493_v26, %v1075_v1  ;;  %v589_v26 = vadd.s32 4294967295, %v573_v25 }
 0x221   : > { %vm590_vm15 = vcmp.ge.s32.totalorder %v589_v26, 0  ;;  %vm591_vm0 = vcmp.lt.s32.totalorder %v589_v26, 16 }
 0x222   : > { %vm1237_vm2 = vmand %vm590_vm15, %vm591_vm0 }
 0x22e   : > { %v511_v27 = vpop.permute.xlu2 %510 }
 0x22f   : > { %v1149_v34 = vmul.f32 %v511_v27, %v1091_v9  ;;  %v1152_v35 = vmul.f32 %v511_v27, %v1093_v10 }
 0x235   : > { %v505_v28 = vpop.permute.xlu1 %504  ;;  %v499_v29 = vpop.permute.xlu0 %498 }
 0x236   : > { %v1143_v32 = vmul.f32 %v505_v28, %v1077_v2  ;;  %v1146_v33 = vmul.f32 %v505_v28, %v1083_v5  ;;  %v1155_v36 = vmul.f32 %v499_v29, %v1087_v7  ;;  %v1158_v0 = vmul.f32 %v499_v29, %v1089_v8 }
 0x238   : > { %v538_v1 = vmax.f32 %v1137_v30, %v1143_v32  ;;  %v547_v2 = vmax.f32 %v1140_v31, %v1146_v33  ;;  %v520_v5 = vadd.f32 %v1155_v36, %v1137_v30  ;;  %v529_v9 = vadd.f32 %v1158_v0, %v1140_v31 }
 0x239   : > { %v539_v10 = vmax.f32 %v1155_v36, %v1149_v34  ;;  %v548_v7 = vmax.f32 %v1158_v0, %v1152_v35 }
 0x23a   : > { %v521_v8 = vadd.f32 %v520_v5, %v1143_v32  ;;  %v530_v37 = vadd.f32 %v529_v9, %v1146_v33  ;;  %v702_v9 = vstv %s1199_s15 }
 0x23b   : > { %v540_v38 = vmax.f32 %v538_v1, %v539_v10  ;;  %v549_v39 = vmax.f32 %v547_v2, %v548_v7 }
 0x23c   : > { %v522_v40 = vadd.f32 %v521_v8, %v1149_v34  ;;  %v531_v41 = vadd.f32 %v530_v37, %v1152_v35  ;;  %v698_v8 = vstv %s1201_s16 }
 0x23d   : > { %v541_v42 = vrot.slane %v540_v38, 4  ;;  %v550_v43 = vrot.slane %v549_v39, 4 }
 0x23e   : > { %v523_v44 = vrot.slane %v522_v40, 4  ;;  %v532_v45 = vrot.slane %v531_v41, 4 }
 0x23f   : > { %v542_v46 = vmax.f32 %v540_v38, %v541_v42  ;;  %v551_v47 = vmax.f32 %v549_v39, %v550_v43  ;;  %v610_v38 = vadd.s32 1, %v573_v25  ;;  %v655_v42 = vstv %s1206_s19 }
 0x240   : > { %v524_v48 = vadd.f32 %v523_v44, %v522_v40  ;;  %v533_v49 = vadd.f32 %v532_v45, %v531_v41  ;;  %v651_v44 = vstv %s1210_s21 }
 0x241   : > { %v543_v50 = vrot.slane %v542_v46, 2  ;;  %v552_v51 = vrot.slane %v551_v47, 2  ;;  %vm611_vm5 = vcmp.ge.s32.totalorder %v610_v38, 0  ;;  %vm612_vm6 = vcmp.lt.s32.totalorder %v610_v38, 16 }
 0x242   : > { %v525_v52 = vrot.slane %v524_v48, 2  ;;  %v534_v53 = vrot.slane %v533_v49, 2  ;;  %vm1265_vm7 = vmand %vm611_vm5, %vm612_vm6 }
 0x243   : > { %v544_v54 = vmax.f32 %v542_v46, %v543_v50  ;;  %v553_v55 = vmax.f32 %v551_v47, %v552_v51  ;;  %v727_v47 = vstv %s1213_s22 }
 0x244   : > { %v526_v56 = vadd.f32 %v525_v52, %v524_v48  ;;  %v535_v57 = vadd.f32 %v534_v53, %v533_v49  ;;  %v731_v48 = vstv %s1208_s20  ;;  %v714_v49 = vstv %s1191_s12  ;;  %s1277_s12 = sld [smem:[#allocation5 + $0x11]]  ;;  %s319_s20 = scalar_lea.vmem %s1341_s8, %s937_s11 }
 0x245   : > { %v545_v58 = vrot.slane %v544_v54, 1  ;;  %v554_v59 = vrot.slane %v553_v55, 1  ;;  %v743_v53 = vstv %s1195_s13  ;;  %s1007_s13 = smov 112  }
 0x246   : > { %v527_v60 = vrot.slane %v526_v56, 1  ;;  %v536_v61 = vrot.slane %v535_v57, 1 }
 0x247   : > { %v555_v62 = vmax.f32 %v553_v55, %v554_v59  ;;  %v546_v4 = vmax.f32 %v544_v54, %v545_v58 }
 0x248   : > { %v537_v3 = vadd.f32 %v536_v61, %v535_v57  ;;  %v528_v11 = vadd.f32 %v527_v60, %v526_v56  ;;  %v667_v57 = vstv %s1197_s14  ;;  %s1008_s14 = smov 16   ;;  %v572_v61 = vld [vmem:[%s1339_s6] sm:$0x3] }
 0x249   : > { %v568_v6 = vrot.slane %v555_v62, 7  ;;  %vm721_vm10 = vcmp.ge.s32.totalorder %v572_v61, 0  ;;  %vm722_vm12 = vcmp.lt.s32.totalorder %v572_v61, 16 }
 0x24a   : > { %v558_v12 = vrot.slane %v537_v3, 7  ;;  %v659_v3 = vstv %s1219_s24 }
 0x24b   : > { %v569_v13 = vsel %vm396_vm3, %v546_v4, %v568_v6  ;;  %v706_v4 = vstv %s1228_s25  ;;  %v735_v6 = vstv %s1235_s26 }
 0x24c   : > { %571 = vst.msk [vmem:[#allocation3] sm:$0x3] %vm1177_vm11, %v569_v13  ;;  %v559_v14 = vsel %vm396_vm3, %v528_v11, %v558_v12  ;;  %v663_v12 = vstv %s1215_s23  ;;  %v710_v13 = vstv %s1241_s29 }
 0x24d   : > { %565 = vst.msk [vmem:[#allocation2] sm:$0x3] %vm1177_vm11, %v559_v14 }
 0x253   : > { %v1187_v15 = vld [vmem:[#allocation3] sm:$0x3] }
 0x254   : > { %v621_v23 = vperm.slane %v1187_v15, 0  ;;  %v574_v16 = vld [vmem:[#allocation2] sm:$0x3]  ;;  %v622_v20 = vperm.slane %v1187_v15, 1 }
 0x255   : > { %v575_v17 = vmul.f32 0.03125, %v574_v16  ;;  %v637_v16 = vsel %vm1221_vm1, %v1187_v15, 0.0 }
 0x256   : > { %625 = vrot.lane.b32.xlu0 %v621_v23, %s1005_s9 }
 0x257   : > { %v579_v18 = vperm.slane %v575_v17, 1  ;;  %v578_v19 = vperm.slane %v575_v17, 0  ;;  %v602_v7 = vsel %vm1221_vm1, %v575_v17, 0.0  ;;  %v739_v17 = vstv %s1244_s30  ;;  %vm723_vm1 = vmand %vm721_vm10, %vm722_vm12 }
 0x258   : > { %v703_v45 = vmul.f32 %v702_v9, %v602_v7  ;;  %v656_v58 = vmul.f32 %v655_v42, %v602_v7  ;;  %v732_v59 = vmul.f32 %v731_v48, %v602_v7  ;;  %v715_v9 = vmul.f32 %v714_v49, %v637_v16 }
 0x259   : > { %584 = vrot.lane.b32.xlu1 %v579_v18, %s1005_s9  ;;  %582 = vrot.lane.b32.xlu2 %v578_v19, %s1005_s9  ;;  %v744_v7 = vmul.f32 %v743_v53, %v637_v16 }
 0x25e   : > { %640 = vrot.lane.b32.xlu0 %v622_v20, %s1006_s10 }
 0x261   : > { %605 = vrot.lane.b32.xlu1 %v579_v18, %s1006_s10  ;;  %603 = vrot.lane.b32.xlu2 %v578_v19, %s1006_s10 }
 0x269   : > { %638 = vrot.lane.b32.xlu1 %v621_v23, %s1006_s10  ;;  %627 = vrot.lane.b32.xlu2 %v622_v20, %s1005_s9  ;;  %s1261_s9 = sld [smem:[#allocation5 + $0xb]] }
 0x26a   : > { %s1269_s10 = sld [smem:[#allocation5 + $0xe]] }
 0x270   : > { %v718_v42 = vstv %s1269_s10 }
 0x2b3   : > { %v583_v21 = vpop.permute.xlu2 %582 }
 0x2bb   : > { %v1193_v22 = vpop.permute.xlu2 %603 }
 0x2c3   : > { %v628_v29 = vpop.permute.xlu2 %627 }
 0x2c8   : > { %v626_v27 = vpop.permute.xlu0 %625 }
 0x2c9   : > { %v629_v5 = vsel %vm586_vm14, %v626_v27, %v628_v29  ;;  %v630_v50 = vsel %vm586_vm14, %v628_v29, %v626_v27 }
 0x2ca   : > { %v633_v41 = vrot.slane %v629_v5, 7 }
 0x2cb   : > { %v585_v28 = vpop.permute.xlu1 %584 }
 0x2cc   : > { %v587_v1 = vsel %vm586_vm14, %v583_v21, %v585_v28  ;;  %v588_v37 = vsel %vm586_vm14, %v585_v28, %v583_v21  ;;  %v634_v54 = vsel %vm396_vm3, %v630_v50, %v633_v41  ;;  %v671_v41 = vstv %s1261_s9 }
 0x2cd   : > { %v595_v10 = vrot.slane %v587_v1, 7  ;;  %v636_v14 = vsel %vm1237_vm2, %v634_v54, 0.0 }
 0x2ce   : > { %v664_v26 = vmul.f32 %v663_v12, %v636_v14  ;;  %v711_v27 = vmul.f32 %v710_v13, %v636_v14  ;;  %v740_v28 = vmul.f32 %v739_v17, %v636_v14 }
 0x2cf   : > { %v596_v40 = vsel %vm396_vm3, %v588_v37, %v595_v10 }
 0x2d0   : > { %v598_v43 = vsel %vm1237_vm2, %v596_v40, 0.0  ;;  %v641_v29 = vpop.permute.xlu0 %640 }
 0x2d1   : > { %v699_v46 = vmul.f32 %v698_v8, %v598_v43  ;;  %v652_v55 = vmul.f32 %v651_v44, %v598_v43  ;;  %v728_v60 = vmul.f32 %v727_v47, %v598_v43  ;;  %v668_v8 = vmul.f32 %v667_v57, %v637_v16 }
 0x2d2   : > { %v747_v43 = vstv %s1277_s12 }
 0x2d3   : > { %v704_v51 = vadd.f32 %v703_v45, %v699_v46  ;;  %v606_v52 = vpop.permute.xlu1 %605  ;;  %v657_v18 = vadd.f32 %v656_v58, %v652_v55  ;;  %v733_v20 = vadd.f32 %v732_v59, %v728_v60 }
 0x2d4   : > { %v609_v56 = vsel %vm607_vm4, %v606_v52, %v1193_v22  ;;  %v608_v11 = vsel %vm607_vm4, %v1193_v22, %v606_v52 }
 0x2d5   : > { %v616_v62 = vrot.slane %v609_v56, 7 }
 0x2d7   : > { %v617_v23 = vsel %vm396_vm3, %v608_v11, %v616_v62  ;;  %v686_v62 = vadd.s32 4294967295, %v572_v61 }
 0x2d8   : > { %v619_v19 = vsel %vm1265_vm7, %v617_v23, 0.0 }
 0x2d9   : > { %v660_v21 = vmul.f32 %v659_v3, %v619_v19  ;;  %v707_v22 = vmul.f32 %v706_v4, %v619_v19  ;;  %v736_v25 = vmul.f32 %v735_v6, %v619_v19  ;;  %v762_v3 = vadd.s32 1, %v572_v61 }
 0x2da   : > { %vm687_vm13 = vcmp.ge.s32.totalorder %v686_v62, 0  ;;  %vm688_vm14 = vcmp.lt.s32.totalorder %v686_v62, 16 }
 0x2db   : > { %v661_v1 = vadd.f32 %v660_v21, %v657_v18  ;;  %v708_v5 = vadd.f32 %v707_v22, %v704_v51  ;;  %v737_v2 = vadd.f32 %v736_v25, %v733_v20  ;;  %v639_v15 = vpop.permute.xlu1 %638  ;;  %vm763_vm15 = vcmp.ge.s32.totalorder %v762_v3, 0  ;;  %vm689_vm2 = vmand %vm687_vm13, %vm688_vm14 }
 0x2dc   : > { %v643_v10 = vsel %vm607_vm4, %v641_v29, %v639_v15  ;;  %v642_v44 = vsel %vm607_vm4, %v639_v15, %v641_v29  ;;  %vm764_vm0 = vcmp.lt.s32.totalorder %v762_v3, 16 }
 0x2dd   : > { %v712_v37 = vadd.f32 %v711_v27, %v708_v5  ;;  %v646_v38 = vrot.slane %v643_v10, 7  ;;  %v741_v39 = vadd.f32 %v740_v28, %v737_v2  ;;  %v665_v40 = vadd.f32 %v664_v26, %v661_v1  ;;  %vm765_vm4 = vmand %vm763_vm15, %vm764_vm0 }
 0x2de   : > { %v774_v26 = vstv %s933_s17 }
 0x2df   : > { %v647_v45 = vsel %vm396_vm3, %v642_v44, %v646_v38  ;;  %v745_v46 = vadd.f32 %v744_v7, %v741_v39  ;;  %v669_v47 = vadd.f32 %v668_v8, %v665_v40  ;;  %v716_v48 = vadd.f32 %v715_v9, %v712_v37 }
 0x2e0   : > { %v649_v49 = vsel %vm1265_vm7, %v647_v45, 0.0 }
 0x2e1   : > { %v672_v50 = vmul.f32 %v671_v41, %v649_v49  ;;  %v719_v51 = vmul.f32 %v718_v42, %v649_v49  ;;  %v748_v52 = vmul.f32 %v747_v43, %v649_v49 }
 0x2e3   : > { %v749_v53 = vadd.f32 %v748_v52, %v745_v46  ;;  %v673_v54 = vadd.f32 %v672_v50, %v669_v47  ;;  %v720_v55 = vadd.f32 %v719_v51, %v716_v48 }
 0x2e5   : > { %v751_v56 = vperm.slane %v749_v53, 0  ;;  %v676_v57 = vperm.slane %v673_v54, 1  ;;  %v675_v58 = vperm.slane %v673_v54, 0  ;;  %v752_v59 = vperm.slane %v749_v53, 1 }
 0x2e6   : > { %v724_v20 = vsel %vm723_vm1, %v720_v55, 0.0 }
 0x2e7   : > { %755 = vrot.lane.b32.xlu0 %v751_v56, %s1007_s13  ;;  %681 = vrot.lane.b32.xlu1 %v676_v57, %s1008_s14 }
 0x2e8   : > { %679 = vrot.lane.b32.xlu2 %v675_v58, %s1008_s14 }
 0x2f0   : > { %757 = vrot.lane.b32.xlu2 %v752_v59, %s1007_s13 }
 0x342   : > { %v680_v60 = vpop.permute.xlu2 %679 }
 0x34a   : > { %v758_v4 = vpop.permute.xlu2 %757 }
 0x359   : > { %v756_v6 = vpop.permute.xlu0 %755  ;;  %v682_v11 = vpop.permute.xlu1 %681 }
 0x35a   : > { %v761_v12 = vsel %vm759_vm8, %v758_v4, %v756_v6  ;;  %v684_v13 = vsel %vm683_vm9, %v680_v60, %v682_v11  ;;  %v760_v16 = vsel %vm759_vm8, %v756_v6, %v758_v4  ;;  %v685_v17 = vsel %vm683_vm9, %v682_v11, %v680_v60 }
 0x35b   : > { %v768_v14 = vrot.slane %v761_v12, 7  ;;  %v692_v23 = vrot.slane %v684_v13, 7 }
 0x35d   : > { %v769_v18 = vsel %vm396_vm3, %v760_v16, %v768_v14  ;;  %v693_v19 = vsel %vm396_vm3, %v685_v17, %v692_v23 }
 0x35e   : > { %v695_v21 = vsel %vm689_vm2, %v693_v19, 0.0  ;;  %v771_v25 = vsel %vm765_vm4, %v769_v18, 0.0 }
 0x35f   : > { %v725_v22 = vadd.f32 %v724_v20, %v695_v21 }
 0x361   : > { %v772_v27 = vadd.f32 %v771_v25, %v725_v22 }
 0x363   : > { %v775_v28 = vadd.f32 %v774_v26, %v772_v27 }
 0x365   : > { %v934_v29 = vmul.f32 -1.442695, %v775_v28 }
 0x367   : > { %973 = vpow2.f32 %v934_v29 }
 0x36d   : > { %v974_v1 = vpop.eup %973 }
 0x36e   : > { %v779_v5 = vadd.f32 1.0, %v974_v1 }
 0x370   : > { %975 = vrcp.f32 %v779_v5  ;;  %v791_v9 = vand.u32 2147483648, %v779_v5  ;;  %v789_v7 = vand.u32 2147483647, %v779_v5  ;;  %vm785_vm3 = vweird.f32 %v779_v5 }
 0x372   : > { %v792_v37 = vor.u32 1.1754944e-38, %v791_v9  ;;  %vm790_vm7 = vcmp.eq.f32.partialorder %v789_v7, 8.507059e+37 }
 0x376   : > { %v976_v2 = vpop.eup %975 }
 0x377   : > { %v781_v24 = vmul.f32 %v976_v2, %v779_v5  ;;  %vm786_vm5 = vweird.f32 %v976_v2 }
 0x378   : > { %vm787_vm6 = vmor %vm785_vm3, %vm786_vm5 }
 0x379   : > { %v782_v15 = vsub.f32 1.0, %v781_v24 }
 0x37b   : > { %v783_v10 = vmul.f32 %v976_v2, %v782_v15 }
 0x37d   : > { %v784_v8 = vadd.f32 %v976_v2, %v783_v10 }
 0x37f   : > { %v788_v38 = vsel %vm787_vm6, %v976_v2, %v784_v8 }
 0x380   : > { %v793_v39 = vsel %vm790_vm7, %v792_v37, %v788_v38 }
 0x381   : > { %795 = vst.msk [vmem:[#allocation4] sm:$0x3] %vm1177_vm11, %v793_v39 }
 0x388   : > { %v804_v40 = vld [vmem:[#allocation4] sm:$0x3] }
 0x389   : > { %v814_v41 = vperm.slane %v804_v40, 0  ;;  %v815_v42 = vperm.slane %v804_v40, 1 }
 0x38b   : > { %v818_v43 = vmul.f32 %v814_v41, %v1137_v30  ;;  %v819_v44 = vmul.f32 %v815_v42, %v1140_v31  ;;  %v820_v45 = vmul.f32 %v814_v41, %v1155_v36  ;;  %v821_v46 = vmul.f32 %v815_v42, %v1158_v0 }
 0x38c   : > { %v822_v47 = vmul.f32 %v814_v41, %v1143_v32  ;;  %v823_v63 = vmul.f32 %v815_v42, %v1146_v33  ;;  %v824_v48 = vmul.f32 %v814_v41, %v1149_v34  ;;  %v825_v49 = vmul.f32 %v815_v42, %v1152_v35 }
 0x38d   : > { %826 = vst [vmem:[%s319_s20] sm:$0xff] %v818_v43 }
 0x38e   : > { %827 = vst [vmem:[%s319_s20 + $0x8] sm:$0xff] %v819_v44 }
 0x38f   : > { %828 = vst [vmem:[%s319_s20 + $0x10] sm:$0xff] %v820_v45 }
 0x390   : > { %829 = vst [vmem:[%s319_s20 + $0x18] sm:$0xff] %v821_v46 }
 0x391   : > { %830 = vst [vmem:[%s319_s20 + $0x20] sm:$0xff] %v822_v47 }
 0x392   : > { %831 = vst [vmem:[%s319_s20 + $0x28] sm:$0xff] %v823_v63 }
 0x393   : > { %832 = vst [vmem:[%s319_s20 + $0x30] sm:$0xff] %v824_v48 }
 0x394   : > { %833 = vst [vmem:[%s319_s20 + $0x38] sm:$0xff] %v825_v49 }
 0x395 PF: > { %s19_s27 = sadd.s32 1, %s1002_s27  }
 0x396   : > { %p16_p7 = scmp.ge.s32.totalorder %s19_s27, 4  }
 0x398   :  { %18 = sbr.rel (!%p16_p7) target bundleno = 1 (0x1), region = 87 }
 0x39d   :  { %855 = vsyncpa [#allocation6], 1 }
 0x39e   :  { %857 = vsyncpa [#allocation6 + $0x1], 1 }

</bundles_post_ra>
